<compile_context>
chip_gen: v6e
topology: v6e:2x2x1
jax: 0.10.0
libtpu: 0.0.40
codegen_flags: <defaults>
</compile_context>

<pallas_src>
import functools
import math

import jax
import jax.numpy as jnp
from jax.experimental import pallas as pl
from jax.experimental.pallas import tpu as pltpu

_LANE = 128
_MASK_NEG = -1e30


def _round_up(x, m):
    return (x + m - 1) // m * m


def _cdiv(a, b):
    return (a + b - 1) // b


def _vmem_capacity_bytes():
    """Per-core VMEM capacity; falls back to the smallest (v7x, 64 MiB)."""
    try:
        return int(pltpu.get_tpu_info().vmem_capacity_bytes)
    except Exception:
        return 64 * 1024 * 1024


def _sublane_align(itemsize):
    # bf16 packs 2 rows per sublane, int8/fp8 pack 4: round row tiles so small
    # batches don't force masked/relayout handling (perf review).
    return {1: 32, 2: 16}.get(itemsize, 8)


def _infonce_all_kernel(f1_ref, f2_ref, ce_ref, m_scr, l_scr, d_scr, *acc,
                        inv_t, bs, tile, mask_cols, n_k):
    """One (row_tile i, col_tile j, k_chunk k) step of the online-LSE CE."""
    i = pl.program_id(0)            # score-matrix row tile ("parallel")
    j = pl.program_id(1)            # score-matrix column tile (softmax redn)
    k = pl.program_id(2)            # feature chunk (matmul redn, innermost)
    nc = pl.num_programs(1)

    @pl.when((j == 0) & (k == 0))
    def _init():
        m_scr[...] = jnp.full(m_scr.shape, -jnp.inf, jnp.float32)
        l_scr[...] = jnp.zeros(l_scr.shape, jnp.float32)
        d_scr[...] = jnp.zeros(d_scr.shape, jnp.float32)

    # Transposed score tile: s_t[a, b] = <f2[j*tile + a], f1[i*tile + b]>.
    # Row index on the lane axis -> (1, tile) lane-dense accumulators + output.
    s_part = jax.lax.dot_general(
        f2_ref[...], f1_ref[...], (((1,), (1,)), ((), ())),
        preferred_element_type=jnp.float32)

    def _online_softmax(s_raw):
        # TODO(synk): pre-scale the f1 row tile by inv_t once per row tile when
        # bs_pad > d_pad to drop this full-tile multiply.
        s = s_raw * inv_t

        # Positive (diagonal) logit straight from the score tile: only the
        # i == j tile holds the diagonal (no d_pad-wide recompute).
        @pl.when(i == j)
        def _diag():
            a = jax.lax.broadcasted_iota(jnp.int32, s.shape, 0)
            b = jax.lax.broadcasted_iota(jnp.int32, s.shape, 1)
            d_scr[...] = jnp.sum(jnp.where(a == b, s, 0.0), axis=0,
                                 keepdims=True)

        if mask_cols:
            # Padded score-columns live on the sublane axis here, so a cheap
            # (tile, 1) iota + compare is enough (broadcast in the select).
            # TODO(synk): gate the select to the last column tile only.
            col = j * tile + jax.lax.broadcasted_iota(
                jnp.int32, (s.shape[0], 1), 0)
            s = jnp.where(col < bs, s, _MASK_NEG)

        m_prev = m_scr[...]
        m_new = jnp.maximum(m_prev, jnp.max(s, axis=0, keepdims=True))
        l_scr[...] = (jnp.exp(m_prev - m_new) * l_scr[...]
                      + jnp.sum(jnp.exp(s - m_new), axis=0, keepdims=True))
        m_scr[...] = m_new

        @pl.when(j == nc - 1)
        def _finalize():
            # (1, tile) lane-dense store -> unmasked vst, full-width writeback.
            ce_ref[...] = m_scr[...] + jnp.log(l_scr[...]) - d_scr[...]

    if n_k == 1:
        _online_softmax(s_part)
    else:
        acc_scr, = acc

        @pl.when(k == 0)
        def _first():
            acc_scr[...] = s_part

        @pl.when(k != 0)
        def _accum():
            acc_scr[...] = acc_scr[...] + s_part

        @pl.when(k == n_k - 1)
        def _last():
            _online_softmax(acc_scr[...])


def _infonce_pos_kernel(f1_ref, f2_ref, ce_ref, s_scr, *, inv_t, bs, n_k):
    """contrast_sample='positive': masked row is [0,...,s_ii/T,...,0], so
    CE_i = logsumexp([s_ii/T, 0 x (bs-1)]) - s_ii/T -- no matmul needed."""
    k = pl.program_id(1)

    @pl.when(k == 0)
    def _init():
        s_scr[...] = jnp.zeros(s_scr.shape, jnp.float32)

    f1 = f1_ref[...].astype(jnp.float32)
    f2 = f2_ref[...].astype(jnp.float32)
    s_scr[...] += jnp.sum(f1 * f2, axis=-1, keepdims=True)

    @pl.when(k == n_k - 1)
    def _finalize():
        s = s_scr[...] * inv_t
        m = jnp.maximum(s, 0.0)
        lse = m + jnp.log(jnp.exp(s - m) + (bs - 1.0) * jnp.exp(-m))
        ce_ref[...] = lse - s


def infonce_loss(cl_features, temperature=0.1, contrast_sample='all', *,
                 block_rows=None, block_k=None):
    """Pallas implementation of InfoNCELoss.forward; returns a scalar f32.

    block_rows / block_k are optional tuning overrides for the score-tile row
    size and the feature-chunk size (both rounded to hardware alignment).
    """
    if cl_features.ndim < 3:
        raise ValueError('`features` needs to be [bsz, n_views, ...],'
                         'at least 3 dimensions are required')
    if cl_features.ndim > 3:
        cl_features = cl_features.reshape(
            cl_features.shape[0], cl_features.shape[1], -1)
    if contrast_sample not in ('all', 'positive'):
        raise ValueError('Contrastive sample: all{pos&neg} or positive(positive)')

    bs, n_views, d = cl_features.shape
    if n_views < 2:
        raise ValueError('`features` needs at least 2 views')

    itemsize = jnp.dtype(cl_features.dtype).itemsize
    sub = _sublane_align(itemsize)

    # Generation-aware VMEM budget: ~45% of capacity, capped at 48 MiB
    # (~29 MiB on v7x's 64 MiB parts, 48 MiB on v5e/v6e's 128 MiB parts).
    vmem_cap = _vmem_capacity_bytes()
    vmem_limit = max(min(int(vmem_cap * 0.45), 48 * 1024 * 1024),
                     24 * 1024 * 1024)
    tile_budget = int(vmem_limit * 0.8)

    # ---- score-tile row/col size: big for MXU / step amortization, but keep
    # padding waste small (cost scales with (bs_pad / bs)^2). ----
    d_pad = _round_up(d, _LANE)
    if block_rows is not None:
        tile = _round_up(min(block_rows, _round_up(bs, sub)), sub)
    elif bs <= 128:
        tile = _round_up(bs, sub)
    elif d_pad <= 256:
        # Softmax/VPU-bound regime: among {512, 256, 128} take the largest
        # tile that achieves the minimum batch padding.
        cands = (512, 256, 128)
        pads = {c: _round_up(bs, c) for c in cands}
        best = min(pads.values())
        tile = max(c for c in cands if pads[c] == best)
    else:
        tile = 256          # feeds the 256x256 MXUs of v6e / v7x
    # TODO(synk): v5e f32 (HBM-bound) would benefit from asymmetric tm=512
    # row tiles; needs off-diagonal-aware positive-logit extraction.
    # TODO(synk): on v7x with nr == 1 split the column reduction across the
    # two TensorCores with a small (m, l) combine.
    bs_pad = _round_up(bs, tile)
    nr = bs_pad // tile

    # ---- feature (K) chunking: bound VMEM by tiling the contraction dim
    # instead of shrinking the MXU-shaped score tile. ----
    if block_k is not None:
        tk = min(_round_up(d_pad, _LANE), max(_LANE, _round_up(block_k, _LANE)))
    else:
        fixed = 3 * 4 * tile * tile + (1 << 16)     # score acc/temps + misc
        avail = max(tile_budget - fixed, 2 * 2 * tile * _LANE * itemsize)
        tk = (avail // (2 * 2 * tile * itemsize)) // _LANE * _LANE  # 2 in x 2 buf
        tk = max(_LANE, min(d_pad, tk))
    n_k = _cdiv(d_pad, tk)
    d_pad = n_k * tk

    x = cl_features
    if bs_pad != bs or d_pad != d:
        x = jnp.pad(x, ((0, bs_pad - bs), (0, 0), (0, d_pad - d)))
    # Fuse (view, feature): view v / chunk k is lane-block (v * n_k + k) of the
    # fused axis; this reshape is contiguous, so both views (and every K chunk)
    # DMA straight out of the original layout.
    x2d = x.reshape(bs_pad, n_views * d_pad)

    inv_t = 1.0 / float(temperature)

    if contrast_sample == 'all':
        kernel = functools.partial(
            _infonce_all_kernel, inv_t=inv_t, bs=bs, tile=tile,
            mask_cols=(bs_pad != bs), n_k=n_k)
        grid = (nr, nr, n_k)
        in_specs = [
            pl.BlockSpec((tile, tk), lambda i, j, k: (i, k)),          # view 0
            # TODO(synk): pipeline_mode=pl.Buffered(3) if profiles show exposed
            # DMA on this stream for small D (keep 2 on v7x when VMEM is tight).
            pl.BlockSpec((tile, tk), lambda i, j, k: (j, n_k + k)),    # view 1
        ]
        out_shape = jax.ShapeDtypeStruct((1, bs_pad), jnp.float32)
        out_specs = pl.BlockSpec((1, tile), lambda i, j, k: (0, i))
        scratch = [pltpu.VMEM((1, tile), jnp.float32),     # running max
                   pltpu.VMEM((1, tile), jnp.float32),     # running sum-exp
                   pltpu.VMEM((1, tile), jnp.float32)]     # positive logit
        if n_k > 1:
            scratch.append(pltpu.VMEM((tile, tile), jnp.float32))  # score acc
        dims = ("parallel", "arbitrary", "arbitrary")

        ce_rows = pl.pallas_call(
            kernel,
            out_shape=out_shape,
            grid=grid,
            in_specs=in_specs,
            out_specs=out_specs,
            scratch_shapes=scratch,
            compiler_params=pltpu.CompilerParams(
                dimension_semantics=dims,
                vmem_limit_bytes=vmem_limit),
        )(x2d, x2d)[0, :bs]
    else:  # 'positive'
        kernel = functools.partial(_infonce_pos_kernel, inv_t=inv_t, bs=bs,
                                   n_k=n_k)
        grid = (nr, n_k)
        in_specs = [
            pl.BlockSpec((tile, tk), lambda i, k: (i, k)),
            pl.BlockSpec((tile, tk), lambda i, k: (i, n_k + k)),
        ]
        out_shape = jax.ShapeDtypeStruct((bs_pad, 1), jnp.float32)
        out_specs = pl.BlockSpec((tile, 1), lambda i, k: (i, 0))
        scratch = [pltpu.VMEM((tile, 1), jnp.float32)]
        dims = ("parallel", "arbitrary")

        ce_rows = pl.pallas_call(
            kernel,
            out_shape=out_shape,
            grid=grid,
            in_specs=in_specs,
            out_specs=out_specs,
            scratch_shapes=scratch,
            compiler_params=pltpu.CompilerParams(
                dimension_semantics=dims,
                vmem_limit_bytes=vmem_limit),
        )(x2d, x2d)[:bs, 0]

    # Mean CE over the real batch rows, times 2 * temperature (PyTorch module).
    return 2.0 * float(temperature) * jnp.mean(ce_rows)


def _reference_loss(cl_features, temperature=0.1, contrast_sample='all'):
    """Pure-JAX reference mirroring the PyTorch module (f32, HIGHEST matmul)."""
    x = cl_features.reshape(cl_features.shape[0], cl_features.shape[1], -1)
    f1 = x[:, 0].astype(jnp.float32)
    f2 = x[:, 1].astype(jnp.float32)
    score = jnp.matmul(f1, f2.T, precision=jax.lax.Precision.HIGHEST)
    score = score / temperature
    bs = score.shape[0]
    if contrast_sample == 'positive':
        score = score * jnp.eye(bs, dtype=score.dtype)
    logp = jax.nn.log_softmax(score, axis=-1)
    ce = -jnp.mean(jnp.diagonal(logp))
    return 2.0 * temperature * ce


if __name__ == "__main__":
    key = jax.random.PRNGKey(0)
    k1, k2 = jax.random.split(key)

    # Case 1: 4-D input ([bsz, n_views, ...] -> flatten); bs=6 is not a
    # sublane multiple, so the padded-row/column masking path is exercised.
    feats_small = jax.random.normal(k1, (6, 2, 4, 8), dtype=jnp.float32)
    # Case 2: forced tiny tiles so the multi-tile online-logsumexp, the i == j
    # diagonal extraction and the feature (K) chunking paths all run.
    feats_ktiled = jax.random.normal(k2, (12, 2, 300), dtype=jnp.float32)

    cases = [
        (feats_small, {}),
        (feats_ktiled, dict(block_rows=8, block_k=128)),
    ]
    for feats, overrides in cases:
        for mode in ('all', 'positive'):
            loss = jax.block_until_ready(
                infonce_loss(feats, temperature=0.1, contrast_sample=mode,
                             **overrides))
            ref = _reference_loss(feats, temperature=0.1,
                                  contrast_sample=mode)
            assert math.isfinite(float(loss)), f"{mode}: loss is not finite"
            # The in-kernel MXU matmul uses the hardware default precision for
            # f32 operands while the reference uses Precision.HIGHEST; the
            # tolerance documents that gap (per review).
            tol = 5e-3 * max(1.0, abs(float(ref)))
            assert abs(float(loss) - float(ref)) < tol, (
                mode, overrides, float(loss), float(ref))

    print("KERNEL_OK")
</pallas_src>

<mosaic_0001>
module attributes {stable_mosaic.version = 11 : i64} {
  func.func @_infonce_all_kernel(%arg0: i32, %arg1: i32, %arg2: i32, %arg3: memref<8x128xf32, #tpu.memory_space<vmem>>, %arg4: memref<8x128xf32, #tpu.memory_space<vmem>>, %arg5: memref<1x8xf32, #tpu.memory_space<vmem>>, %arg6: memref<1x8xf32, #tpu.memory_space<vmem>>, %arg7: memref<1x8xf32, #tpu.memory_space<vmem>>, %arg8: memref<1x8xf32, #tpu.memory_space<vmem>>) attributes {dimension_semantics = [#tpu.dimension_semantics<parallel>, #tpu.dimension_semantics<arbitrary>, #tpu.dimension_semantics<arbitrary>], iteration_bounds = array<i64: 1, 1, 1>, scalar_prefetch = 0 : i64, scratch_operands = 3 : i64, tpu.core_type = #tpu.core_type<tc>, window_params = [{transform_indices = @transform_0, window_bounds = array<i64: 8, 128>}, {transform_indices = @transform_1, window_bounds = array<i64: 8, 128>}, {transform_indices = @transform_2, window_bounds = array<i64: 1, 8>}]} {
    %c0_i32 = arith.constant 0 : i32
    %0 = arith.cmpi eq, %arg1, %c0_i32 : i32
    %c0_i32_0 = arith.constant 0 : i32
    %1 = arith.cmpi eq, %arg2, %c0_i32_0 : i32
    %2 = arith.andi %0, %1 : i1
    %3 = arith.extui %2 : i1 to i32
    %c0_i32_1 = arith.constant 0 : i32
    %4 = arith.cmpi ne, %3, %c0_i32_1 : i32
    scf.if %4 {
      %cst_20 = arith.constant 0xFF800000 : f32
      %42 = vector.broadcast %cst_20 : f32 to vector<1x8xf32>
      %c0_21 = arith.constant 0 : index
      %c0_22 = arith.constant 0 : index
      %43 = vector.load %arg6[%c0_21, %c0_22] : memref<1x8xf32, #tpu.memory_space<vmem>>, vector<1x8xf32>
      tpu.vector_store %arg6[%c0_21, %c0_22], %42 {strides = array<i32>} : memref<1x8xf32, #tpu.memory_space<vmem>>, vector<1x8xf32>,
      %cst_23 = arith.constant 0.000000e+00 : f32
      %44 = vector.broadcast %cst_23 : f32 to vector<1x8xf32>
      %c0_24 = arith.constant 0 : index
      %c0_25 = arith.constant 0 : index
      %45 = vector.load %arg7[%c0_24, %c0_25] : memref<1x8xf32, #tpu.memory_space<vmem>>, vector<1x8xf32>
      tpu.vector_store %arg7[%c0_24, %c0_25], %44 {strides = array<i32>} : memref<1x8xf32, #tpu.memory_space<vmem>>, vector<1x8xf32>,
      %cst_26 = arith.constant 0.000000e+00 : f32
      %46 = vector.broadcast %cst_26 : f32 to vector<1x8xf32>
      %c0_27 = arith.constant 0 : index
      %c0_28 = arith.constant 0 : index
      %47 = vector.load %arg8[%c0_27, %c0_28] : memref<1x8xf32, #tpu.memory_space<vmem>>, vector<1x8xf32>
      tpu.vector_store %arg8[%c0_27, %c0_28], %46 {strides = array<i32>} : memref<1x8xf32, #tpu.memory_space<vmem>>, vector<1x8xf32>,
    } else {
    }
    %c0 = arith.constant 0 : index
    %c0_2 = arith.constant 0 : index
    %5 = vector.load %arg4[%c0, %c0_2] : memref<8x128xf32, #tpu.memory_space<vmem>>, vector<8x128xf32>
    %c0_3 = arith.constant 0 : index
    %c0_4 = arith.constant 0 : index
    %6 = vector.load %arg3[%c0_3, %c0_4] : memref<8x128xf32, #tpu.memory_space<vmem>>, vector<8x128xf32>
    %cst = arith.constant dense<0.000000e+00> : vector<8x8xf32>
    %7 = tpu.matmul %5, %6, %cst {dimension_numbers = #tpu.dot_dimension_numbers<[1], [1], [0], [0], [0, 0, 1, 0], [], []>} : vector<8x128xf32>, vector<8x128xf32>, vector<8x8xf32> -> vector<8x8xf32>
    %cst_5 = arith.constant 1.000000e+01 : f32
    %8 = vector.broadcast %cst_5 : f32 to vector<8x8xf32>
    %9 = arith.mulf %7, %8 : vector<8x8xf32>
    %10 = arith.cmpi eq, %arg0, %arg1 : i32
    %11 = arith.extui %10 : i1 to i32
    %c0_i32_6 = arith.constant 0 : i32
    %12 = arith.cmpi ne, %11, %c0_i32_6 : i32
    scf.if %12 {
      %42 = tpu.iota {dimensions = array<i32: 0>} : vector<8x8xi32>
      %43 = tpu.iota {dimensions = array<i32: 1>} : vector<8x8xi32>
      %44 = arith.cmpi eq, %42, %43 : vector<8x8xi32>
      %cst_20 = arith.constant 0.000000e+00 : f32
      %45 = vector.broadcast %cst_20 : f32 to vector<8x8xf32>
      %46 = arith.select %44, %9, %45 : vector<8x8xi1>, vector<8x8xf32>
      %cst_21 = arith.constant dense<0.000000e+00> : vector<8xf32>
      %47 = vector.multi_reduction <add>, %46, %cst_21 [0] : vector<8x8xf32> to vector<8xf32>
      %48 = vector.shape_cast %47 : vector<8xf32> to vector<1x8xf32>
      %c0_22 = arith.constant 0 : index
      %c0_23 = arith.constant 0 : index
      %49 = vector.load %arg8[%c0_22, %c0_23] : memref<1x8xf32, #tpu.memory_space<vmem>>, vector<1x8xf32>
      tpu.vector_store %arg8[%c0_22, %c0_23], %48 {strides = array<i32>} : memref<1x8xf32, #tpu.memory_space<vmem>>, vector<1x8xf32>,
    } else {
    }
    %c8_i32 = arith.constant 8 : i32
    %13 = arith.muli %arg1, %c8_i32 : i32
    %14 = tpu.iota {dimensions = array<i32: 0>} : vector<8x1xi32>
    %15 = vector.broadcast %13 : i32 to vector<8x1xi32>
    %16 = arith.addi %15, %14 : vector<8x1xi32>
    %c6_i32 = arith.constant 6 : i32
    %17 = vector.broadcast %c6_i32 : i32 to vector<8x1xi32>
    %18 = arith.cmpi slt, %16, %17 : vector<8x1xi32>
    %cst_7 = arith.constant -1.000000e+30 : f32
    %19 = vector.shape_cast %18 : vector<8x1xi1> to vector<8x1xi1>
    %20 = vector.broadcast %19 : vector<8x1xi1> to vector<8x8xi1>
    %21 = vector.broadcast %cst_7 : f32 to vector<8x8xf32>
    %22 = arith.select %20, %9, %21 : vector<8x8xi1>, vector<8x8xf32>
    %c0_8 = arith.constant 0 : index
    %c0_9 = arith.constant 0 : index
    %23 = vector.load %arg6[%c0_8, %c0_9] : memref<1x8xf32, #tpu.memory_space<vmem>>, vector<1x8xf32>
    %cst_10 = arith.constant dense<0xFF800000> : vector<8xf32>
    %24 = vector.multi_reduction <maximumf>, %22, %cst_10 [0] : vector<8x8xf32> to vector<8xf32>
    %25 = vector.shape_cast %24 : vector<8xf32> to vector<1x8xf32>
    %26 = arith.maximumf %23, %25 : vector<1x8xf32>
    %27 = arith.subf %23, %26 : vector<1x8xf32>
    %28 = math.exp %27 : vector<1x8xf32>
    %c0_11 = arith.constant 0 : index
    %c0_12 = arith.constant 0 : index
    %29 = vector.load %arg7[%c0_11, %c0_12] : memref<1x8xf32, #tpu.memory_space<vmem>>, vector<1x8xf32>
    %30 = arith.mulf %28, %29 : vector<1x8xf32>
    %31 = vector.broadcast %26 : vector<1x8xf32> to vector<8x8xf32>
    %32 = arith.subf %22, %31 : vector<8x8xf32>
    %33 = math.exp %32 : vector<8x8xf32>
    %cst_13 = arith.constant dense<0.000000e+00> : vector<8xf32>
    %34 = vector.multi_reduction <add>, %33, %cst_13 [0] : vector<8x8xf32> to vector<8xf32>
    %35 = vector.shape_cast %34 : vector<8xf32> to vector<1x8xf32>
    %36 = arith.addf %30, %35 : vector<1x8xf32>
    %c0_14 = arith.constant 0 : index
    %c0_15 = arith.constant 0 : index
    %37 = vector.load %arg7[%c0_14, %c0_15] : memref<1x8xf32, #tpu.memory_space<vmem>>, vector<1x8xf32>
    tpu.vector_store %arg7[%c0_14, %c0_15], %36 {strides = array<i32>} : memref<1x8xf32, #tpu.memory_space<vmem>>, vector<1x8xf32>,
    %c0_16 = arith.constant 0 : index
    %c0_17 = arith.constant 0 : index
    %38 = vector.load %arg6[%c0_16, %c0_17] : memref<1x8xf32, #tpu.memory_space<vmem>>, vector<1x8xf32>
    tpu.vector_store %arg6[%c0_16, %c0_17], %26 {strides = array<i32>} : memref<1x8xf32, #tpu.memory_space<vmem>>, vector<1x8xf32>,
    %c0_i32_18 = arith.constant 0 : i32
    %39 = arith.cmpi eq, %arg1, %c0_i32_18 : i32
    %40 = arith.extui %39 : i1 to i32
    %c0_i32_19 = arith.constant 0 : i32
    %41 = arith.cmpi ne, %40, %c0_i32_19 : i32
    scf.if %41 {
      %c0_20 = arith.constant 0 : index
      %c0_21 = arith.constant 0 : index
      %42 = vector.load %arg6[%c0_20, %c0_21] : memref<1x8xf32, #tpu.memory_space<vmem>>, vector<1x8xf32>
      %c0_22 = arith.constant 0 : index
      %c0_23 = arith.constant 0 : index
      %43 = vector.load %arg7[%c0_22, %c0_23] : memref<1x8xf32, #tpu.memory_space<vmem>>, vector<1x8xf32>
      %44 = math.log %43 : vector<1x8xf32>
      %45 = arith.addf %42, %44 : vector<1x8xf32>
      %c0_24 = arith.constant 0 : index
      %c0_25 = arith.constant 0 : index
      %46 = vector.load %arg8[%c0_24, %c0_25] : memref<1x8xf32, #tpu.memory_space<vmem>>, vector<1x8xf32>
      %47 = arith.subf %45, %46 : vector<1x8xf32>
      %c0_26 = arith.constant 0 : index
      %c0_27 = arith.constant 0 : index
      %48 = vector.load %arg5[%c0_26, %c0_27] : memref<1x8xf32, #tpu.memory_space<vmem>>, vector<1x8xf32>
      tpu.vector_store %arg5[%c0_26, %c0_27], %47 {strides = array<i32>} : memref<1x8xf32, #tpu.memory_space<vmem>>, vector<1x8xf32>,
    } else {
    }
    return
  }
  func.func @transform_0(%arg0: i32, %arg1: i32, %arg2: i32) -> (i32, i32) {
    %c0_i32 = arith.constant 0 : i32
    return %arg0, %arg2 : i32, i32
  }
  func.func @transform_1(%arg0: i32, %arg1: i32, %arg2: i32) -> (i32, i32) {
    %c1_i32 = arith.constant 1 : i32
    %0 = arith.addi %c1_i32, %arg2 : i32
    %c0_i32 = arith.constant 0 : i32
    return %arg1, %0 : i32, i32
  }
  func.func @transform_2(%arg0: i32, %arg1: i32, %arg2: i32) -> (i32, i32) {
    %c0_i32 = arith.constant 0 : i32
    %c0_i32_0 = arith.constant 0 : i32
    return %c0_i32, %arg0 : i32, i32
  }
}

</mosaic_0001>

<bundles_post_ra>
// kernel: tpu_custom_call.1
= control target key start
LH: loop header
LB: loop body
LE: loop exit
PB: predicated region body
PF: predicated region fallthrough
CT: control target
= control target key end

     0   :  { %7 = vsyncpa [#allocation6], 0  ;;  %s343_s0 = inlined_call_operand.hbm [shape: f32[8,256], index: 0, kind: input, shape index: {}]   ;;  %s344_s1 = inlined_call_operand.hbm [shape: f32[8,256], index: 1, kind: input, shape index: {}]   ;;  %s345_s2 = inlined_call_operand.hbm [shape: f32[1,8], index: 2, kind: output, shape index: {}]  }
   0x1   :  { %8 = vsyncpa [#allocation9], 0 }
   0x2   :  { %9 = vsyncpa [#allocation7], 0  ;;  %s214_s11 = scalar_lea.hbm %s344_s1, 128  ;;  %s303_s12 = smov [#allocation5]  }
   0x3   :  { %s16_s13 = sshll.u32 %s303_s12, 4  ;;  %s304_s14 = smov [#allocation8]   ;;  %s17_s13 = int_to_ptr.vmem [resolvable:$true] %s16_s13 }
   0x4   :  { %s29_s15 = sshll.u32 %s304_s14, 4  ;;  %s242_s16 = scalar_lea.vmem %s17_s13, 128  ;;  %s30_s15 = int_to_ptr.vmem [resolvable:$true] %s29_s15 }
   0x5   :  { %p243_p0 = scmp.ne.s32.totalorder %s17_s13, %s242_s16  ;;  %p247_p1 = scmp.lt.s32.totalorder %s17_s13, %s17_s13 }
   0x6   :  { %p248_p2 = scmp.lt.s32.totalorder %s242_s16, %s242_s16 }
   0x8   :  { %p249_p3 = por %p248_p2, %p247_p1 }
   0xa   :  { %p250_p4 = pnand %p249_p3, %p243_p0 }
   0xc   :  { %253 = shalt.err (!%p250_p4)
}
   0xd   :  { %19 = dma.hbm_to_vmem [thread:$0]  %s343_s0, 128, %s17_s13, [#allocation6]  }
   0xe   :  { %s264_s19 = scalar_lea.vmem %s30_s15, 128  ;;  %p269_p6 = scmp.lt.s32.totalorder %s30_s15, %s30_s15 }
   0xf   :  { %p265_p5 = scmp.ne.s32.totalorder %s30_s15, %s264_s19  ;;  %p270_p7 = scmp.lt.s32.totalorder %s264_s19, %s264_s19 }
  0x11   :  { %p271_p8 = por %p270_p7, %p269_p6 }
  0x13   :  { %p272_p9 = pnand %p271_p8, %p265_p5 }
  0x15   :  { %275 = shalt.err (!%p272_p9)
}
  0x16   :  { %32 = dma.hbm_to_vmem [thread:$0]  %s214_s11, 128, %s30_s15, [#allocation9]  }
  0x17   :  { %297 = dma.done.wait [#allocation6], 128  }
  0x18   :  { %298 = vsyncadd [#allocation6], 4294967168 }
  0x19   :  { %299 = dma.done.wait [#allocation9], 128  }
  0x1a   :  { %300 = vsyncadd [#allocation9], 4294967168  ;;  %vm46_vm0 = vcmask 57344   ;;  %v305_v0 = vmov 0.0   ;;  %vm306_vm1 = vmmov 0   ;;  %v307_v1 = vmov -inf  }
  0x1b   :  { %48 = vst.msk [vmem:[#allocation3] sm:$0x1] %vm46_vm0, %v305_v0  ;;  %49 = vst.msk [vmem:[#allocation4] sm:$0x1] %vm46_vm0, %v305_v0  ;;  %217 = vmatprep.subr.mxu0 %v305_v0  ;;  %219 = vmatprep.mubr.msk.f32.mxu0 %vm306_vm1, %v305_v0  ;;  %v51_v2 = vld [vmem:[#allocation5] sm:$0xff]  ;;  %v50_v3 = vld [vmem:[#allocation8] sm:$0xff]  ;;  %v127_v4 = vlaneseq }
  0x1c   :  { %47 = vst.msk [vmem:[#allocation2] sm:$0x1] %vm46_vm0, %v307_v1  ;;  %218 = vmatpush3.xpose.msra.mxu0 %v51_v2  ;;  %vm133_vm4 = vcmask 64512   ;;  %s308_s0 = smov [#allocation10]  }
  0x1d   :  { %v128_v5 = vshrl.u32 %v127_v4, 7  ;;  %v130_v6 = vand.u32 127, %v127_v4  ;;  %s204_s1 = sshll.u32 %s308_s0, 4  ;;  %s205_s1 = int_to_ptr.vmem [resolvable:$true] %s204_s1 }
  0x1e   :  { %s277_s20 = scalar_lea.vmem %s205_s1, 16  ;;  %s281_s21 = scalar_lea.vmem %s205_s1, 32 }
  0x1f   :  { %220 = vmatmul.mubr.f32.vlgmr.msra.gmra.mxu0 %v50_v3  ;;  %vm131_vm2 = vcmp.eq.s32.totalorder %v128_v5, %v130_v6  ;;  %vm148_vm3 = vcmp.lt.s32.totalorder %v128_v5, 6  ;;  %v170_v27 = vsub.s32 0, %v128_v5  ;;  %p278_p10 = scmp.ne.s32.totalorder %s205_s1, %s277_s20  ;;  %p282_p11 = scmp.lt.s32.totalorder %s205_s1, %s205_s1 }
  0x20   :  { %p283_p12 = scmp.lt.s32.totalorder %s281_s21, %s277_s20 }
  0x22   :  { %v165_v41 = vld [vmem:[#allocation3] sm:$0x1]  ;;  %p284_p13 = por %p283_p12, %p282_p11 }
  0x23   :  { %v152_v24 = vld [vmem:[#allocation2] sm:$0x1] }
  0x24   :  { %p285_p0 = pnand %p284_p13, %p278_p10 }
  0xdf   :  { %v118_v7 = vpop.f32.mrf.mxu0 }
  0xe0   :  { %v122_v8 = vmul.f32 10.0, %v118_v7 }
  0xe1   :  { %v221_v9 = vpop.f32.mrf.mxu0 }
  0xe2   :  { %v132_v10 = vsel %vm131_vm2, %v122_v8, 0.0  ;;  %v151_v11 = vsel %vm148_vm3, %v122_v8, -1e+30 }
  0xe3   :  { %v134_v12 = vsel %vm133_vm4, %v132_v10, 0.0  ;;  %v154_v13 = vsel %vm133_vm4, %v151_v11, -inf }
  0xe4   :  { %v135_v14 = vrot.slane %v134_v12, 4  ;;  %v155_v15 = vrot.slane %v154_v13, 4 }
  0xe6   :  { %v136_v16 = vadd.f32 %v135_v14, %v134_v12  ;;  %v156_v17 = vmax.f32 %v154_v13, %v155_v15 }
  0xe8   :  { %v137_v18 = vrot.slane %v136_v16, 2  ;;  %v157_v19 = vrot.slane %v156_v17, 2 }
  0xea   :  { %v138_v20 = vadd.f32 %v137_v18, %v136_v16  ;;  %v158_v21 = vmax.f32 %v156_v17, %v157_v19 }
  0xec   :  { %v139_v22 = vrot.slane %v138_v20, 1  ;;  %v159_v23 = vrot.slane %v158_v21, 1 }
  0xee   :  { %v140_v25 = vadd.f32 %v139_v22, %v138_v20  ;;  %v160_v26 = vmax.f32 %v158_v21, %v159_v23 }
  0xf0   :  { %142 = vst.msk [vmem:[#allocation4] sm:$0x1] %vm46_vm0, %v140_v25  ;;  %v161_v28 = vmax.f32 %v152_v24, %v160_v26 }
  0xf2   :  { %v171_v29 = vrot.slane %v161_v28, %v170_v27  ;;  %186 = vst.msk [vmem:[#allocation2] sm:$0x1] %vm46_vm0, %v161_v28  ;;  %v162_v32 = vsub.f32 %v152_v24, %v161_v28 }
  0xf4   :  { %v173_v30 = vsub.f32 %v151_v11, %v171_v29  ;;  %v163_v33 = vmul.f32 1.442695, %v162_v32 }
  0xf6   :  { %v174_v31 = vmul.f32 1.442695, %v173_v30 }
  0xf7   :  { %v195_v51 = vld [vmem:[#allocation4] sm:$0x1] }
  0xf8   :  { %228 = vpow2.f32 %v174_v31 }
  0xf9   :  { %230 = vpow2.f32 %v163_v33  ;;  %v190_v49 = vld [vmem:[#allocation2] sm:$0x1] }
 0x105   :  { %v229_v34 = vpop.eup %228 }
 0x106   :  { %v176_v35 = vsel %vm133_vm4, %v229_v34, 0.0  ;;  %v231_v40 = vpop.eup %230 }
 0x107   :  { %v177_v36 = vrot.slane %v176_v35, 4  ;;  %v166_v43 = vmul.f32 %v231_v40, %v165_v41 }
 0x109   :  { %v178_v37 = vadd.f32 %v177_v36, %v176_v35 }
 0x10b   :  { %v179_v38 = vrot.slane %v178_v37, 2 }
 0x10d   :  { %v180_v39 = vadd.f32 %v179_v38, %v178_v37 }
 0x10f   :  { %v181_v42 = vrot.slane %v180_v39, 1 }
 0x111   :  { %v182_v44 = vadd.f32 %v181_v42, %v180_v39 }
 0x113   :  { %v183_v45 = vadd.f32 %v182_v44, %v166_v43 }
 0x115   :  { %185 = vst.msk [vmem:[#allocation3] sm:$0x1] %vm46_vm0, %v183_v45 }
 0x11c   :  { %v191_v46 = vld [vmem:[#allocation3] sm:$0x1] }
 0x11d   :  { %232 = vlog2.f32 %v191_v46 }
 0x12a   :  { %v233_v47 = vpop.eup %232 }
 0x12b   :  { %v193_v48 = vmul.f32 0.6931472, %v233_v47 }
 0x12d   :  { %v194_v50 = vadd.f32 %v193_v48, %v190_v49 }
 0x12f   :  { %v196_v52 = vsub.f32 %v194_v50, %v195_v51 }
 0x131   :  { %197 = vst.msk [vmem:[#allocation10] sm:$0x1] %vm46_vm0, %v196_v52 }
 0x132   :  { %288 = shalt.err (!%p285_p0)
}
 0x133   :  { %207 = dma.vmem_to_hbm [thread:$0]  %s205_s1, 16, %s345_s2, [#allocation7]  }
 0x134   :  { %301 = dma.done.wait [#allocation7], 16  }
 0x135   :  { %302 = vsyncadd [#allocation7], 4294967280 }
 0x136   :  { %211 = vsyncpa [#allocation6], 1 }
 0x137   :  { %212 = vsyncpa [#allocation9], 1 }
 0x138   :  { %213 = vsyncpa [#allocation7], 1 }

</bundles_post_ra>
